<compile_context>
chip_gen: v6e
topology: v6e:2x2x1
jax: 0.10.0
libtpu: 0.0.40
codegen_flags: <defaults>
</compile_context>

<pallas_src>
import math

import jax
import jax.numpy as jnp
from jax.experimental import pallas as pl
from jax.experimental.pallas import tpu as pltpu

SUBLANE = 8
LANE = 128
WIDE = 4 * LANE                 # 512 lanes per row of the flattened slab
TARGET_BLOCK_ELEMS = 512 * 512  # ~1 MiB f32 per input block


def _cdiv(a: int, b: int) -> int:
    return (a + b - 1) // b


def _round_up(x: int, m: int) -> int:
    return _cdiv(x, m) * m


def _heatmap_sse_kernel(pred_ref, gt_ref, out_ref):
    """Accumulate the squared-error sum of this tile into out_ref[0] (8, WIDE)."""
    # out block depends only on the leading ("parallel") grid axis, so it is
    # resident across the inner reduction axis -> acts as the accumulator.
    @pl.when(pl.program_id(1) == 0)
    def _():
        out_ref[...] = jnp.zeros_like(out_ref)

    d = pred_ref[...].astype(jnp.float32) - gt_ref[...].astype(jnp.float32)
    sq = d * d
    rows, wide = sq.shape
    # Sublane-aligned fold onto an (8, WIDE) vreg-shaped slab: the reshape is a
    # pure sublane split (no relayout) and the axis-0 sum is element-wise VPU
    # adds only -- no per-step cross-lane/XLU reduce, no serial scalar chain.
    out_ref[0] += jnp.sum(sq.reshape(rows // SUBLANE, SUBLANE, wide), axis=0)


def heatmap_loss(pred: jax.Array, gt: jax.Array) -> jax.Array:
    """Mean squared error over all elements of NCHW heatmaps (scalar f32)."""
    assert pred.shape == gt.shape, "pred and gt must have identical shapes"
    n_elems = math.prod(int(s) for s in pred.shape)

    # ---- choose a tiling of the flattened element stream -------------------
    rows_needed = _cdiv(n_elems, WIDE)
    tile_rows = min(TARGET_BLOCK_ELEMS // WIDE, _round_up(rows_needed, SUBLANE))
    tile_rows = max(SUBLANE, _round_up(tile_rows, SUBLANE))

    n_tiles = _cdiv(rows_needed, tile_rows)
    # Two independent row-block groups when there is enough work: the leading
    # "parallel" axis lets v7x use both TensorCores (no effect on v5e/v6e).
    n_par = 2 if n_tiles >= 2 else 1
    n_tiles = _round_up(n_tiles, n_par)
    steps = n_tiles // n_par

    rows = n_tiles * tile_rows
    n_padded = rows * WIDE

    # ---- flatten (+ exact zero padding) and reshape to a contiguous slab ---
    pred_flat = pred.reshape(-1)
    gt_flat = gt.reshape(-1)
    pad = n_padded - n_elems
    if pad:
        pred_flat = jnp.pad(pred_flat, (0, pad))
        gt_flat = jnp.pad(gt_flat, (0, pad))
    pred2d = pred_flat.reshape(rows, WIDE)
    gt2d = gt_flat.reshape(rows, WIDE)

    in_spec = pl.BlockSpec((tile_rows, WIDE), lambda p, i: (p * steps + i, 0))
    out_spec = pl.BlockSpec((1, SUBLANE, WIDE), lambda p, i: (p, 0, 0))

    cost = pl.CostEstimate(
        flops=3 * n_padded,  # sub + mul + add per element
        transcendentals=0,
        bytes_accessed=2 * n_padded * pred.dtype.itemsize
        + n_par * SUBLANE * WIDE * 4,
    )

    partial = pl.pallas_call(
        _heatmap_sse_kernel,
        out_shape=jax.ShapeDtypeStruct((n_par, SUBLANE, WIDE), jnp.float32),
        grid_spec=pltpu.PrefetchScalarGridSpec(
            num_scalar_prefetch=0,
            grid=(n_par, steps),
            in_specs=[in_spec, in_spec],
            out_specs=out_spec,
        ),
        compiler_params=pltpu.CompilerParams(
            dimension_semantics=("parallel", "arbitrary"),
        ),
        cost_estimate=cost,
    )(pred2d, gt2d)

    # Tiny final reduce + mean scaling outside the kernel (keeps the kernel
    # free of captured constants; padding zeros contribute 0, so dividing by
    # the true element count is exact).
    return jnp.sum(partial) / jnp.float32(n_elems)


def _ref_loss(pred, gt):
    return jnp.mean(
        jnp.mean(jnp.mean(jnp.mean((pred - gt) ** 2, axis=3), axis=2), axis=1),
        axis=0,
    )


if __name__ == "__main__":
    key = jax.random.PRNGKey(0)

    # Primary small case (single tile path).
    kp, kg, key = jax.random.split(key, 3)
    B, C, H, W = 2, 4, 16, 16
    pred = jax.random.normal(kp, (B, C, H, W), dtype=jnp.float32)
    gt = jax.random.normal(kg, (B, C, H, W), dtype=jnp.float32)
    loss = heatmap_loss(pred, gt)
    jax.block_until_ready(loss)
    ref = _ref_loss(pred, gt)
    assert jnp.allclose(loss, ref, rtol=1e-5, atol=1e-6), (loss, ref)

    # Non-128-aligned spatial dims: exercises the zero-padding path.
    kp, kg, key = jax.random.split(key, 3)
    pred = jax.random.normal(kp, (3, 5, 17, 19), dtype=jnp.float32)
    gt = jax.random.normal(kg, (3, 5, 17, 19), dtype=jnp.float32)
    loss = heatmap_loss(pred, gt)
    jax.block_until_ready(loss)
    ref = _ref_loss(pred, gt)
    assert jnp.allclose(loss, ref, rtol=1e-5, atol=1e-6), (loss, ref)

    # Larger case: exercises the multi-tile / parallel-groups path.
    kp, kg, key = jax.random.split(key, 3)
    pred = jax.random.normal(kp, (8, 16, 64, 64), dtype=jnp.float32)
    gt = jax.random.normal(kg, (8, 16, 64, 64), dtype=jnp.float32)
    loss = heatmap_loss(pred, gt)
    jax.block_until_ready(loss)
    ref = _ref_loss(pred, gt)
    assert jnp.allclose(loss, ref, rtol=1e-5, atol=1e-6), (loss, ref)

    print("KERNEL_OK")
</pallas_src>

<mosaic_0001>
module attributes {stable_mosaic.version = 11 : i64} {
  func.func @_heatmap_sse_kernel(%arg0: i32, %arg1: i32, %arg2: memref<8x512xf32, #tpu.memory_space<vmem>>, %arg3: memref<8x512xf32, #tpu.memory_space<vmem>>, %arg4: memref<1x8x512xf32, #tpu.memory_space<vmem>>) attributes {dimension_semantics = [#tpu.dimension_semantics<parallel>, #tpu.dimension_semantics<arbitrary>], iteration_bounds = array<i64: 1, 1>, scalar_prefetch = 0 : i64, scratch_operands = 0 : i64, tpu.core_type = #tpu.core_type<tc>, window_params = [{transform_indices = @transform_0, window_bounds = array<i64: 8, 512>}, {transform_indices = @transform_1, window_bounds = array<i64: 8, 512>}, {transform_indices = @transform_2, window_bounds = array<i64: 1, 8, 512>}]} {
    %c0_i32 = arith.constant 0 : i32
    %0 = arith.cmpi eq, %arg1, %c0_i32 : i32
    %1 = arith.extui %0 : i1 to i32
    %c0_i32_0 = arith.constant 0 : i32
    %2 = arith.cmpi ne, %1, %c0_i32_0 : i32
    scf.if %2 {
      %cst_10 = arith.constant 0.000000e+00 : f32
      %15 = vector.broadcast %cst_10 : f32 to vector<1x8x512xf32>
      %c0_11 = arith.constant 0 : index
      %c0_12 = arith.constant 0 : index
      %c0_13 = arith.constant 0 : index
      %16 = vector.load %arg4[%c0_11, %c0_12, %c0_13] : memref<1x8x512xf32, #tpu.memory_space<vmem>>, vector<1x8x512xf32>
      tpu.vector_store %arg4[%c0_11, %c0_12, %c0_13], %15 {strides = array<i32>} : memref<1x8x512xf32, #tpu.memory_space<vmem>>, vector<1x8x512xf32>,
    } else {
    }
    %c0 = arith.constant 0 : index
    %c0_1 = arith.constant 0 : index
    %3 = vector.load %arg2[%c0, %c0_1] : memref<8x512xf32, #tpu.memory_space<vmem>>, vector<8x512xf32>
    %c0_2 = arith.constant 0 : index
    %c0_3 = arith.constant 0 : index
    %4 = vector.load %arg3[%c0_2, %c0_3] : memref<8x512xf32, #tpu.memory_space<vmem>>, vector<8x512xf32>
    %5 = arith.subf %3, %4 : vector<8x512xf32>
    %6 = arith.mulf %5, %5 : vector<8x512xf32>
    %c0_4 = arith.constant 0 : index
    %c0_5 = arith.constant 0 : index
    %c0_6 = arith.constant 0 : index
    %7 = vector.load %arg4[%c0_4, %c0_5, %c0_6] : memref<1x8x512xf32, #tpu.memory_space<vmem>>, vector<1x8x512xf32>
    %8 = vector.shape_cast %7 : vector<1x8x512xf32> to vector<8x512xf32>
    %9 = vector.shape_cast %6 : vector<8x512xf32> to vector<1x8x512xf32>
    %cst = arith.constant dense<0.000000e+00> : vector<8x512xf32>
    %10 = vector.multi_reduction <add>, %9, %cst [0] : vector<1x8x512xf32> to vector<8x512xf32>
    %11 = arith.addf %8, %10 : vector<8x512xf32>
    %c0_7 = arith.constant 0 : index
    %c0_8 = arith.constant 0 : index
    %c0_9 = arith.constant 0 : index
    %12 = vector.load %arg4[%c0_7, %c0_8, %c0_9] : memref<1x8x512xf32, #tpu.memory_space<vmem>>, vector<1x8x512xf32>
    %13 = vector.shape_cast %12 : vector<1x8x512xf32> to vector<8x512xf32>
    %14 = vector.shape_cast %11 : vector<8x512xf32> to vector<1x8x512xf32>
    tpu.vector_store %arg4[%c0_7, %c0_8, %c0_9], %14 {strides = array<i32>} : memref<1x8x512xf32, #tpu.memory_space<vmem>>, vector<1x8x512xf32>,
    return
  }
  func.func @transform_0(%arg0: i32, %arg1: i32) -> (i32, i32) {
    %c1_i32 = arith.constant 1 : i32
    %0 = arith.muli %arg0, %c1_i32 : i32
    %1 = arith.addi %0, %arg1 : i32
    %c0_i32 = arith.constant 0 : i32
    %c0_i32_0 = arith.constant 0 : i32
    return %1, %c0_i32 : i32, i32
  }
  func.func @transform_1(%arg0: i32, %arg1: i32) -> (i32, i32) {
    %c1_i32 = arith.constant 1 : i32
    %0 = arith.muli %arg0, %c1_i32 : i32
    %1 = arith.addi %0, %arg1 : i32
    %c0_i32 = arith.constant 0 : i32
    %c0_i32_0 = arith.constant 0 : i32
    return %1, %c0_i32 : i32, i32
  }
  func.func @transform_2(%arg0: i32, %arg1: i32) -> (i32, i32, i32) {
    %c0_i32 = arith.constant 0 : i32
    %c0_i32_0 = arith.constant 0 : i32
    %c0_i32_1 = arith.constant 0 : i32
    return %arg0, %c0_i32, %c0_i32_0 : i32, i32, i32
  }
}

</mosaic_0001>

<bundles_post_ra>
// kernel: tpu_custom_call.1
= control target key start
LH: loop header
LB: loop body
LE: loop exit
PB: predicated region body
PF: predicated region fallthrough
CT: control target
= control target key end

     0   :  { %7 = vsyncpa [#allocation3], 0  ;;  %s199_s0 = inlined_call_operand.hbm [shape: f32[8,512], index: 0, kind: input, shape index: {}]   ;;  %s200_s1 = inlined_call_operand.hbm [shape: f32[8,512], index: 1, kind: input, shape index: {}]   ;;  %s201_s2 = inlined_call_operand.hbm [shape: f32[1,8,512], index: 2, kind: output, shape index: {}]  }
   0x1   :  { %8 = vsyncpa [#allocation6], 0 }
   0x2   :  { %9 = vsyncpa [#allocation4], 0  ;;  %s172_s9 = smov [#allocation2]   ;;  %s173_s11 = smov [#allocation5]  }
   0x3   :  { %s20_s10 = sshll.u32 %s172_s9, 4  ;;  %s34_s12 = sshll.u32 %s173_s11, 4  ;;  %s21_s10 = int_to_ptr.vmem [resolvable:$true] %s20_s10  ;;  %s35_s12 = int_to_ptr.vmem [resolvable:$true] %s34_s12 }
   0x4   :  { %s114_s13 = scalar_lea.vmem %s21_s10, 512  ;;  %p119_p1 = scmp.lt.s32.totalorder %s21_s10, %s21_s10 }
   0x5   :  { %p115_p0 = scmp.ne.s32.totalorder %s21_s10, %s114_s13  ;;  %p120_p2 = scmp.lt.s32.totalorder %s114_s13, %s114_s13 }
   0x7   :  { %p121_p3 = por %p120_p2, %p119_p1 }
   0x9   :  { %p122_p4 = pnand %p121_p3, %p115_p0 }
   0xb   :  { %125 = shalt.err (!%p122_p4)
}
   0xc   :  { %23 = dma.hbm_to_vmem [thread:$0]  %s199_s0, 512, %s21_s10, [#allocation3]  }
   0xd   :  { %s134_s16 = scalar_lea.vmem %s35_s12, 512  ;;  %p139_p6 = scmp.lt.s32.totalorder %s35_s12, %s35_s12 }
   0xe   :  { %p135_p5 = scmp.ne.s32.totalorder %s35_s12, %s134_s16  ;;  %p140_p7 = scmp.lt.s32.totalorder %s134_s16, %s134_s16 }
  0x10   :  { %p141_p8 = por %p140_p7, %p139_p6 }
  0x12   :  { %p142_p9 = pnand %p141_p8, %p135_p5 }
  0x14   :  { %145 = shalt.err (!%p142_p9)
}
  0x15   :  { %37 = dma.hbm_to_vmem [thread:$0]  %s200_s1, 512, %s35_s12, [#allocation6]  }
  0x16   :  { %166 = dma.done.wait [#allocation3], 512  }
  0x17   :  { %167 = vsyncadd [#allocation3], 4294966784 }
  0x18   :  { %168 = dma.done.wait [#allocation6], 512  }
  0x19   :  { %169 = vsyncadd [#allocation6], 4294966784  ;;  %v54_v0 = vld [vmem:[#allocation2] sm:$0xff]  ;;  %v55_v2 = vld [vmem:[#allocation2 + $0x8] sm:$0xff]  ;;  %s174_s0 = smov [#allocation7]  }
  0x1a   :  { %v58_v1 = vld [vmem:[#allocation5] sm:$0xff]  ;;  %v59_v4 = vld [vmem:[#allocation5 + $0x8] sm:$0xff]  ;;  %v56_v5 = vld [vmem:[#allocation2 + $0x10] sm:$0xff]  ;;  %s92_s1 = sshll.u32 %s174_s0, 4  ;;  %s93_s1 = int_to_ptr.vmem [resolvable:$true] %s92_s1 }
  0x1b   :  { %v62_v3 = vsub.f32 %v54_v0, %v58_v1  ;;  %v60_v6 = vld [vmem:[#allocation5 + $0x10] sm:$0xff]  ;;  %v63_v7 = vsub.f32 %v55_v2, %v59_v4  ;;  %v57_v9 = vld [vmem:[#allocation2 + $0x18] sm:$0xff]  ;;  %s146_s19 = scalar_lea.vmem %s93_s1, 512  ;;  %p151_p11 = scmp.lt.s32.totalorder %s93_s1, %s93_s1 }
  0x1c   :  { %v64_v8 = vsub.f32 %v56_v5, %v60_v6  ;;  %v61_v10 = vld [vmem:[#allocation5 + $0x18] sm:$0xff]  ;;  %p147_p10 = scmp.ne.s32.totalorder %s93_s1, %s146_s19  ;;  %p152_p12 = scmp.lt.s32.totalorder %s146_s19, %s146_s19 }
  0x1d   :  { %v66_v11 = vmul.f32 %v62_v3, %v62_v3  ;;  %v65_v12 = vsub.f32 %v57_v9, %v61_v10  ;;  %v67_v13 = vmul.f32 %v63_v7, %v63_v7 }
  0x1e   :  { %v68_v14 = vmul.f32 %v64_v8, %v64_v8  ;;  %p153_p13 = por %p152_p12, %p151_p11 }
  0x1f   :  { %v69_v15 = vmul.f32 %v65_v12, %v65_v12  ;;  %82 = vst [vmem:[#allocation7] sm:$0xff] %v66_v11  ;;  %83 = vst [vmem:[#allocation7 + $0x8] sm:$0xff] %v67_v13 }
  0x20   :  { %84 = vst [vmem:[#allocation7 + $0x10] sm:$0xff] %v68_v14  ;;  %p154_p0 = pnand %p153_p13, %p147_p10 }
  0x21   :  { %85 = vst [vmem:[#allocation7 + $0x18] sm:$0xff] %v69_v15 }
  0x22   :  { %157 = shalt.err (!%p154_p0)
}
  0x23   :  { %95 = dma.vmem_to_hbm [thread:$0]  %s93_s1, 512, %s201_s2, [#allocation4]  }
  0x24   :  { %170 = dma.done.wait [#allocation4], 512  }
  0x25   :  { %171 = vsyncadd [#allocation4], 4294966784 }
  0x26   :  { %99 = vsyncpa [#allocation3], 1 }
  0x27   :  { %100 = vsyncpa [#allocation6], 1 }
  0x28   :  { %101 = vsyncpa [#allocation4], 1 }

</bundles_post_ra>
